<compile_context>
chip_gen: v7x
topology: tpu7x:2x2x1
jax: 0.10.0
libtpu: 0.0.40
codegen_flags: <defaults>
</compile_context>

<pallas_src>
import jax
import jax.numpy as jnp
from jax.experimental import pallas as pl
from jax.experimental.pallas import tpu as pltpu


# ---------------------------------------------------------------------------
# helpers
# ---------------------------------------------------------------------------
def _round_up(v, m):
    return ((v + m - 1) // m) * m


def _pad2(a, rows, cols):
    return jnp.pad(a, ((0, rows - a.shape[0]), (0, cols - a.shape[1])))


# ---------------------------------------------------------------------------
# fused GCN layer kernel:
#   out = finalize( (A+I) @ ( feat @ W ) )      (feat already column-scaled)
# adjacency streamed in (TM, TK) int8 tiles over a (rows, adj-cols) grid;
# feat / W / bias VMEM-resident; f32 VMEM accumulator with pl.when
# init/finalize; row axis "parallel" (megacore), reduction axis "arbitrary".
# ---------------------------------------------------------------------------
def _make_gcn_kernel(tk, finalize):
    def kernel(adj_ref, feat_ref, w_ref, b_ref, dinv_ref, out_ref, acc_ref):
        k = pl.program_id(1)

        @pl.when(k == 0)
        def _init():
            acc_ref[...] = jnp.zeros_like(acc_ref)

        # Feature transform for this k-slab, recomputed per step (cheap vs the
        # adjacency matmul; MXU has slack in this HBM-bound stage).
        off = pl.multiple_of(k * tk, tk)
        fw = jnp.dot(
            feat_ref[pl.ds(off, tk), :], w_ref[...],
            preferred_element_type=jnp.float32,
        ).astype(jnp.bfloat16)

        # int8 edge counts -> bf16 in VMEM, then MXU accumulate in f32.
        acc_ref[...] += jnp.dot(
            adj_ref[...].astype(jnp.bfloat16), fw,
            preferred_element_type=jnp.float32,
        )

        @pl.when(k == pl.num_programs(1) - 1)
        def _fin():
            finalize(acc_ref, dinv_ref, b_ref, out_ref)

    return kernel


def _backbone_finalize(acc_ref, dinv_ref, b_ref, out_ref):
    # h = ReLU(D^-1/2 * acc + bias); emit D^-1/2 * h so the next layer's
    # column scaling is already folded in.
    d = dinv_ref[...]                                    # (tm, 1) f32
    h = jnp.maximum(acc_ref[...] * d + b_ref[...], 0.0)
    out_ref[...] = (h * d).astype(out_ref.dtype)


def _make_head_finalize(c_p):
    def finalize(acc_ref, dinv_ref, b_ref, out_ref):
        # Static lane-boundary slices (c_p = multiple of 128): no iota/where,
        # exp only on the logvar lanes.
        d = dinv_ref[...]
        out_ref[:, :c_p] = acc_ref[:, :c_p] * d + b_ref[:, :c_p]
        out_ref[:, c_p:] = jnp.exp(0.5 * (acc_ref[:, c_p:] * d + b_ref[:, c_p:]))
    return finalize


def _gcn_layer(adj, feat, w, bias, dinv, *, tm, tk, finalize, out_dtype):
    np_ = adj.shape[0]
    f = feat.shape[1]
    co = w.shape[1]
    return pl.pallas_call(
        _make_gcn_kernel(tk, finalize),
        out_shape=jax.ShapeDtypeStruct((np_, co), out_dtype),
        grid_spec=pltpu.PrefetchScalarGridSpec(
            num_scalar_prefetch=0,
            grid=(np_ // tm, np_ // tk),
            in_specs=[
                pl.BlockSpec((tm, tk), lambda i, k: (i, k)),    # (A+I) int8, streamed
                pl.BlockSpec((np_, f), lambda i, k: (0, 0)),    # feat bf16, resident
                pl.BlockSpec((f, co), lambda i, k: (0, 0)),     # weight bf16, resident
                pl.BlockSpec((1, co), lambda i, k: (0, 0)),     # bias f32, resident
                pl.BlockSpec((tm, 1), lambda i, k: (i, 0)),     # D^-1/2 rows, f32
            ],
            out_specs=pl.BlockSpec((tm, co), lambda i, k: (i, 0)),
            scratch_shapes=[pltpu.VMEM((tm, co), jnp.float32)],
        ),
        compiler_params=pltpu.CompilerParams(
            dimension_semantics=("parallel", "arbitrary"),
            vmem_limit_bytes=48 * 1024 * 1024,
        ),
    )(adj, feat, w, bias, dinv)


# ---------------------------------------------------------------------------
# wrapper: pad to MXU/lane-friendly shapes, fuse heads, call the two layers
# ---------------------------------------------------------------------------
def gcn_deep_indep_normal(x, edge_index, params, *, tk_max=2048):
    n, cin = x.shape
    hdim = params["wb"].shape[1]
    cout = params["wm"].shape[1]

    # Padded dims: rows 256/512-aligned, feature dims 128-lane dense.
    np_ = _round_up(n, 256)
    tm = 512 if np_ % 512 == 0 else 256
    cin_p = _round_up(max(cin, 128), 128)
    h_p = _round_up(max(hdim, 128), 128)
    c_p = _round_up(max(cout, 128), 128)

    tk = tm
    while tk * 2 <= tk_max and np_ % (tk * 2) == 0:
        tk *= 2

    src, dst = edge_index[0], edge_index[1]
    nodes = jnp.arange(n, dtype=jnp.int32)

    # Unnormalized (A + I) message counts (row = dst, col = src, matching
    # GCNConv message flow; duplicate edges summed; assumes no explicit self
    # loops in the input).  Single N^2 int pass, cast to int8 before padding.
    counts = (
        jnp.zeros((n, n), jnp.int32)
        .at[dst, src].add(1)
        .at[nodes, nodes].add(1)
    )
    adj_p = _pad2(counts.astype(jnp.int8), np_, np_)

    # Degree (in-degree + self loop) and D^-1/2: O(E), no N^2 scaling passes.
    deg = jnp.zeros((n,), jnp.float32).at[dst].add(1.0) + 1.0
    dinv = jax.lax.rsqrt(deg)
    dinv_col = _pad2(dinv[:, None], np_, 1)                      # (Np, 1) f32

    # Column scaling of Ahat folded into the node features: feat = D^-1/2 X.
    x_scaled = _pad2(x.astype(jnp.float32) * dinv[:, None], np_, cin_p)
    x_scaled = x_scaled.astype(jnp.bfloat16)

    wb_p = _pad2(params["wb"], cin_p, h_p).astype(jnp.bfloat16)
    bb_p = _pad2(params["bb"], 1, h_p).astype(jnp.float32)

    # Fused head weights: [H_p, 2*C_p] (mean lanes [:C_p], logvar [C_p:]).
    wcat = jnp.concatenate(
        [_pad2(params["wm"], h_p, c_p), _pad2(params["wl"], h_p, c_p)], axis=1
    ).astype(jnp.bfloat16)
    bcat = jnp.concatenate(
        [_pad2(params["bm"], 1, c_p), _pad2(params["bl"], 1, c_p)], axis=1
    ).astype(jnp.float32)

    # backbone: h_scaled = D^-1/2 * ReLU(Ahat @ (X Wb) + bb)     [Np, Hp] bf16
    h_scaled = _gcn_layer(
        adj_p, x_scaled, wb_p, bb_p, dinv_col,
        tm=tm, tk=tk, finalize=_backbone_finalize, out_dtype=jnp.bfloat16,
    )

    # fused heads: [mean | exp(0.5*logvar)]                       [Np, 2Cp] f32
    out = _gcn_layer(
        adj_p, h_scaled, wcat, bcat, dinv_col,
        tm=tm, tk=tk, finalize=_make_head_finalize(c_p), out_dtype=jnp.float32,
    )

    mean = out[:n, :cout]
    std = out[:n, c_p:c_p + cout]
    return mean, std


def init_params(key, in_channels, hidden_channels, out_channels):
    """Deterministic glorot-style init matching GCNConv param shapes."""
    k1, k2, k3 = jax.random.split(key, 3)

    def glorot(k, fan_in, fan_out):
        limit = jnp.sqrt(6.0 / (fan_in + fan_out))
        return jax.random.uniform(k, (fan_in, fan_out), jnp.float32, -limit, limit)

    return {
        "wb": glorot(k1, in_channels, hidden_channels),
        "bb": jnp.zeros((1, hidden_channels), jnp.float32),
        "wm": glorot(k2, hidden_channels, out_channels),
        "bm": jnp.zeros((1, out_channels), jnp.float32),
        "wl": glorot(k3, hidden_channels, out_channels),
        "bl": jnp.zeros((1, out_channels), jnp.float32),
    }


if __name__ == "__main__":
    N, IN_C, HID_C, OUT_C = 32, 4, 32, 8

    key = jax.random.PRNGKey(0)
    kx, kp = jax.random.split(key)

    # deterministic node features [N, in_channels]
    x = jax.random.normal(kx, (N, IN_C), dtype=jnp.float32)

    # deterministic bidirectional ring graph edge_index [2, E]
    nodes = jnp.arange(N, dtype=jnp.int32)
    src = jnp.concatenate([nodes, (nodes + 1) % N])
    dst = jnp.concatenate([(nodes + 1) % N, nodes])
    edge_index = jnp.stack([src, dst], axis=0)

    params = init_params(kp, IN_C, HID_C, OUT_C)

    mean, std = gcn_deep_indep_normal(x, edge_index, params)
    jax.block_until_ready((mean, std))

    assert mean.shape == (N, OUT_C) and std.shape == (N, OUT_C)
    assert bool(jnp.all(jnp.isfinite(mean)))
    assert bool(jnp.all(std > 0.0))
    # NOTE: at N=32 the call is launch/latency-bound; benchmark real sizes
    # with an xprof trace (min-of-N), not perf_counter.
    print("KERNEL_OK")
</pallas_src>

<mosaic_0001>
module attributes {stable_mosaic.version = 11 : i64} {
  func.func @kernel(%arg0: i32, %arg1: i32, %arg2: memref<256x256xi8, #tpu.memory_space<vmem>>, %arg3: memref<256x128xbf16, #tpu.memory_space<vmem>>, %arg4: memref<128x128xbf16, #tpu.memory_space<vmem>>, %arg5: memref<1x128xf32, #tpu.memory_space<vmem>>, %arg6: memref<256x1xf32, #tpu.memory_space<vmem>>, %arg7: memref<256x128xbf16, #tpu.memory_space<vmem>>, %arg8: memref<256x128xf32, #tpu.memory_space<vmem>>) attributes {dimension_semantics = [#tpu.dimension_semantics<parallel>, #tpu.dimension_semantics<arbitrary>], iteration_bounds = array<i64: 1, 1>, scalar_prefetch = 0 : i64, scratch_operands = 1 : i64, tpu.core_type = #tpu.core_type<tc>, window_params = [{transform_indices = @transform_0, window_bounds = array<i64: 256, 256>}, {pipeline_mode = #tpu.pipeline_mode<synchronous>, transform_indices = @transform_1, window_bounds = array<i64: 256, 128>}, {pipeline_mode = #tpu.pipeline_mode<synchronous>, transform_indices = @transform_2, window_bounds = array<i64: 128, 128>}, {pipeline_mode = #tpu.pipeline_mode<synchronous>, transform_indices = @transform_3, window_bounds = array<i64: 1, 128>}, {transform_indices = @transform_4, window_bounds = array<i64: 256, 1>}, {transform_indices = @transform_5, window_bounds = array<i64: 256, 128>}]} {
    %c0_i32 = arith.constant 0 : i32
    %0 = arith.cmpi eq, %arg1, %c0_i32 : i32
    %1 = arith.extui %0 : i1 to i32
    %c0_i32_0 = arith.constant 0 : i32
    %2 = arith.cmpi ne, %1, %c0_i32_0 : i32
    scf.if %2 {
      %cst_12 = arith.constant 0.000000e+00 : f32
      %19 = vector.broadcast %cst_12 : f32 to vector<256x128xf32>
      %c0_13 = arith.constant 0 : index
      %c0_14 = arith.constant 0 : index
      %20 = vector.load %arg8[%c0_13, %c0_14] : memref<256x128xf32, #tpu.memory_space<vmem>>, vector<256x128xf32>
      tpu.vector_store %arg8[%c0_13, %c0_14], %19 {strides = array<i32>} : memref<256x128xf32, #tpu.memory_space<vmem>>, vector<256x128xf32>,
    } else {
    }
    %c256_i32 = arith.constant 256 : i32
    %3 = arith.muli %arg1, %c256_i32 : i32
    %4 = tpu.assume_multiple %3, 256 : i32
    %5 = arith.index_cast %4 : i32 to index
    %c0 = arith.constant 0 : index
    %6 = vector.load %arg3[%5, %c0] : memref<256x128xbf16, #tpu.memory_space<vmem>>, vector<256x128xbf16>
    %c0_1 = arith.constant 0 : index
    %c0_2 = arith.constant 0 : index
    %7 = vector.load %arg4[%c0_1, %c0_2] : memref<128x128xbf16, #tpu.memory_space<vmem>>, vector<128x128xbf16>
    %cst = arith.constant dense<0.000000e+00> : vector<256x128xf32>
    %8 = tpu.matmul %6, %7, %cst {dimension_numbers = #tpu.dot_dimension_numbers<[1], [0], [0], [1], [0, 0, 1, 1], [], []>} : vector<256x128xbf16>, vector<128x128xbf16>, vector<256x128xf32> -> vector<256x128xf32>
    %9 = arith.truncf %8 : vector<256x128xf32> to vector<256x128xbf16>
    %c0_3 = arith.constant 0 : index
    %c0_4 = arith.constant 0 : index
    %10 = vector.load %arg8[%c0_3, %c0_4] : memref<256x128xf32, #tpu.memory_space<vmem>>, vector<256x128xf32>
    %c0_5 = arith.constant 0 : index
    %c0_6 = arith.constant 0 : index
    %11 = vector.load %arg2[%c0_5, %c0_6] : memref<256x256xi8, #tpu.memory_space<vmem>>, vector<256x256xi8>
    %12 = arith.sitofp %11 : vector<256x256xi8> to vector<256x256xbf16>
    %cst_7 = arith.constant dense<0.000000e+00> : vector<256x128xf32>
    %13 = tpu.matmul %12, %9, %cst_7 {dimension_numbers = #tpu.dot_dimension_numbers<[1], [0], [0], [1], [0, 0, 1, 1], [], []>} : vector<256x256xbf16>, vector<256x128xbf16>, vector<256x128xf32> -> vector<256x128xf32>
    %14 = arith.addf %10, %13 : vector<256x128xf32>
    %c0_8 = arith.constant 0 : index
    %c0_9 = arith.constant 0 : index
    %15 = vector.load %arg8[%c0_8, %c0_9] : memref<256x128xf32, #tpu.memory_space<vmem>>, vector<256x128xf32>
    tpu.vector_store %arg8[%c0_8, %c0_9], %14 {strides = array<i32>} : memref<256x128xf32, #tpu.memory_space<vmem>>, vector<256x128xf32>,
    %c0_i32_10 = arith.constant 0 : i32
    %16 = arith.cmpi eq, %arg1, %c0_i32_10 : i32
    %17 = arith.extui %16 : i1 to i32
    %c0_i32_11 = arith.constant 0 : i32
    %18 = arith.cmpi ne, %17, %c0_i32_11 : i32
    scf.if %18 {
      %c0_12 = arith.constant 0 : index
      %c0_13 = arith.constant 0 : index
      %19 = vector.load %arg6[%c0_12, %c0_13] : memref<256x1xf32, #tpu.memory_space<vmem>>, vector<256x1xf32>
      %c0_14 = arith.constant 0 : index
      %c0_15 = arith.constant 0 : index
      %20 = vector.load %arg8[%c0_14, %c0_15] : memref<256x128xf32, #tpu.memory_space<vmem>>, vector<256x128xf32>
      %21 = vector.broadcast %19 : vector<256x1xf32> to vector<256x128xf32>
      %22 = arith.mulf %20, %21 : vector<256x128xf32>
      %c0_16 = arith.constant 0 : index
      %c0_17 = arith.constant 0 : index
      %23 = vector.load %arg5[%c0_16, %c0_17] : memref<1x128xf32, #tpu.memory_space<vmem>>, vector<1x128xf32>
      %24 = vector.broadcast %23 : vector<1x128xf32> to vector<256x128xf32>
      %25 = arith.addf %22, %24 : vector<256x128xf32>
      %cst_18 = arith.constant 0.000000e+00 : f32
      %26 = vector.broadcast %cst_18 : f32 to vector<256x128xf32>
      %27 = arith.maximumf %25, %26 : vector<256x128xf32>
      %28 = vector.broadcast %19 : vector<256x1xf32> to vector<256x128xf32>
      %29 = arith.mulf %27, %28 : vector<256x128xf32>
      %30 = arith.truncf %29 : vector<256x128xf32> to vector<256x128xbf16>
      %c0_19 = arith.constant 0 : index
      %c0_20 = arith.constant 0 : index
      %31 = vector.load %arg7[%c0_19, %c0_20] : memref<256x128xbf16, #tpu.memory_space<vmem>>, vector<256x128xbf16>
      tpu.vector_store %arg7[%c0_19, %c0_20], %30 {strides = array<i32>} : memref<256x128xbf16, #tpu.memory_space<vmem>>, vector<256x128xbf16>,
    } else {
    }
    return
  }
  func.func @transform_0(%arg0: i32, %arg1: i32) -> (i32, i32) {
    %c0_i32 = arith.constant 0 : i32
    return %arg0, %arg1 : i32, i32
  }
  func.func @transform_1(%arg0: i32, %arg1: i32) -> (i32, i32) {
    %c0_i32 = arith.constant 0 : i32
    %c0_i32_0 = arith.constant 0 : i32
    %c0_i32_1 = arith.constant 0 : i32
    return %c0_i32, %c0_i32_0 : i32, i32
  }
  func.func @transform_2(%arg0: i32, %arg1: i32) -> (i32, i32) {
    %c0_i32 = arith.constant 0 : i32
    %c0_i32_0 = arith.constant 0 : i32
    %c0_i32_1 = arith.constant 0 : i32
    return %c0_i32, %c0_i32_0 : i32, i32
  }
  func.func @transform_3(%arg0: i32, %arg1: i32) -> (i32, i32) {
    %c0_i32 = arith.constant 0 : i32
    %c0_i32_0 = arith.constant 0 : i32
    %c0_i32_1 = arith.constant 0 : i32
    return %c0_i32, %c0_i32_0 : i32, i32
  }
  func.func @transform_4(%arg0: i32, %arg1: i32) -> (i32, i32) {
    %c0_i32 = arith.constant 0 : i32
    %c0_i32_0 = arith.constant 0 : i32
    return %arg0, %c0_i32 : i32, i32
  }
  func.func @transform_5(%arg0: i32, %arg1: i32) -> (i32, i32) {
    %c0_i32 = arith.constant 0 : i32
    %c0_i32_0 = arith.constant 0 : i32
    return %arg0, %c0_i32 : i32, i32
  }
}

</mosaic_0001>

<bundles_post_ra>
// kernel: tpu_custom_call.1
= control target key start
LH: loop header
LB: loop body
LE: loop exit
PB: predicated region body
PF: predicated region fallthrough
CT: control target
= control target key end

     0   :  { %10 = vsyncpa [#allocation4], 0  ;;  %s2109_s0 = inlined_call_operand.vmem [shape: s8[256,256], index: 0, kind: input, shape index: {}]   ;;  %s2110_s1 = inlined_call_operand.vmem [shape: bf16[256,128], index: 1, kind: input, shape index: {}]   ;;  %s2111_s2 = inlined_call_operand.hbm [shape: bf16[128,128], index: 2, kind: input, shape index: {}]   ;;  %s2112_s3 = inlined_call_operand.vmem [shape: f32[1,128], index: 3, kind: input, shape index: {}]   ;;  %s2113_s4 = inlined_call_operand.vmem [shape: f32[256,1], index: 4, kind: input, shape index: {}]   ;;  %s2114_s5 = inlined_call_operand.hbm [shape: bf16[256,128], index: 5, kind: output, shape index: {}]  }
   0x1   :  { %11 = vsyncpa [#allocation5], 0  ;;  %s1755_s18 = smov [#allocation3]   ;;  %s1707_s22 = scalar_lea.hbm %s2111_s2, 1024 }
   0x2   :  { %s21_s19 = sshll.u32 %s1755_s18, 4  ;;  %p1708_p0 = scmp.ne.s32.totalorder %s2111_s2, %s1707_s22  ;;  %s22_s19 = int_to_ptr.vmem [resolvable:$true] %s21_s19 }
   0x3   :  { %p1711_p1 = scmp.lt.u32.totalorder %s1707_s22, %s2111_s2 }
   0x5   :  { %p1713_p2 = pnand %p1711_p1, %p1708_p0 }
   0x7   :  { %1716 = shalt.err (!%p1713_p2)
}
   0x8   :  { %s1717_s27 = scalar_lea.vmem %s22_s19, 1024  ;;  %p1722_p4 = scmp.lt.s32.totalorder %s22_s19, %s22_s19 }
   0x9   :  { %p1718_p3 = scmp.ne.s32.totalorder %s22_s19, %s1717_s27  ;;  %p1723_p5 = scmp.lt.s32.totalorder %s1717_s27, %s1717_s27 }
   0xb   :  { %p1724_p6 = por %p1723_p5, %p1722_p4 }
   0xd   :  { %p1725_p7 = pnand %p1724_p6, %p1718_p3 }
   0xf   :  { %1728 = shalt.err (!%p1725_p7)
}
  0x10   :  { %s1756_s28 = smov 64   ;;  %s1757_s29 = smov 4  }
  0x11   :  { %27 = dma.hbm_to_vmem [thread:$0]  %s2111_s2, 1024, %s22_s19, [#allocation4], %s1756_s28, %s1756_s28, %s1757_s29  }
  0x12   :  { %1751 = dma.done.wait [#allocation4], 1024  }
  0x13   :  { %1752 = vsyncadd [#allocation4], 4294966272  ;;  %v1683_v0 = vld [vmem:[#allocation3] sm:$0xff]   ;;  %v1684_v1 = vld [vmem:[#allocation3 + $0x8] sm:$0xff]   ;;  %v1758_v28 = vmov 0  }
  0x14   :  { %1612 = vmatprep.subr.bf16.mxu0 %v1683_v0  ;;  %v1685_v2 = vld [vmem:[#allocation3 + $0x10] sm:$0xff]   ;;  %v1686_v3 = vld [vmem:[#allocation3 + $0x18] sm:$0xff]   ;;  %v1691_v4 = vld [vmem:[%s2110_s1] sm:$0xff]   ;;  %1682 = vset.pattern.permute.xlu1 %v1758_v28 }
  0x15   :  { %1613 = vmatpush3.bf16.msra.mxu0 %v1683_v0  ;;  %1628 = vmatprep.mubr.bf16.mxu0 %v1691_v4  ;;  %v1687_v5 = vld [vmem:[#allocation3 + $0x20] sm:$0xff]   ;;  %v1688_v6 = vld [vmem:[#allocation3 + $0x28] sm:$0xff]   ;;  %v1689_v7 = vld [vmem:[#allocation3 + $0x30] sm:$0xff]  }
  0x16   :  { %1614 = vmatprep.subr.bf16.mxu0 %v1684_v1  ;;  %v1690_v8 = vld [vmem:[#allocation3 + $0x38] sm:$0xff]   ;;  %v1692_v9 = vld [vmem:[%s2110_s1 + $0x8] sm:$0xff]   ;;  %v1693_v10 = vld [vmem:[%s2110_s1 + $0x10] sm:$0xff]   ;;  %1681 = vset.pattern.permute.xlu0 %v1758_v28 }
  0x17   :  { %v1694_v11 = vld [vmem:[%s2110_s1 + $0x18] sm:$0xff]   ;;  %v1695_v12 = vld [vmem:[%s2110_s1 + $0x20] sm:$0xff]   ;;  %v1696_v13 = vld [vmem:[%s2110_s1 + $0x28] sm:$0xff]  }
  0x18   :  { %v1697_v14 = vld [vmem:[%s2110_s1 + $0x30] sm:$0xff]   ;;  %v1698_v15 = vld [vmem:[%s2110_s1 + $0x38] sm:$0xff]   ;;  %v1699_v16 = vld [vmem:[%s2110_s1 + $0x40] sm:$0xff]  }
  0x19   :  { %1615 = vmatpush3.bf16.msra.mxu0 %v1684_v1  ;;  %v1700_v17 = vld [vmem:[%s2110_s1 + $0x48] sm:$0xff]   ;;  %v1701_v18 = vld [vmem:[%s2110_s1 + $0x50] sm:$0xff]   ;;  %v1702_v19 = vld [vmem:[%s2110_s1 + $0x58] sm:$0xff]  }
  0x1a   :  { %1616 = vmatprep.subr.bf16.mxu0 %v1685_v2  ;;  %v1703_v20 = vld [vmem:[%s2110_s1 + $0x60] sm:$0xff]   ;;  %v1704_v21 = vld [vmem:[%s2110_s1 + $0x68] sm:$0xff]   ;;  %v1705_v22 = vld [vmem:[%s2110_s1 + $0x70] sm:$0xff]  }
  0x1b   :  { %v1706_v23 = vld [vmem:[%s2110_s1 + $0x78] sm:$0xff]   ;;  %v1856_v24 = vld [vmem:[%s2109_s0 + $0x8] sm:$0xff]  ;;  %v756_v29 = vld [vmem:[%s2113_s4 + $0x10] sm:$0xff] }
  0x1c   :  { %v1861_v25 = vld [vmem:[%s2109_s0 + $0x28] sm:$0xff]  ;;  %v495_v26 = vunpack.c.l.s8.bf16 %v1856_v24  ;;  %v754_v30 = vld [vmem:[%s2113_s4] sm:$0xff]  ;;  %830 = vperm.xlu1 %1682, %v756_v29   ;;  %v757_v32 = vld [vmem:[%s2113_s4 + $0x18] sm:$0xff] }
  0x1d   :  { %1617 = vmatpush3.bf16.msra.mxu0 %v1685_v2  ;;  %v503_v27 = vunpack.c.l.s8.bf16 %v1861_v25  ;;  %820 = vperm.xlu0 %1681, %v754_v30   ;;  %v755_v33 = vld [vmem:[%s2113_s4 + $0x8] sm:$0xff]  ;;  %v758_v40 = vld [vmem:[%s2113_s4 + $0x20] sm:$0xff]  ;;  %v761_v42 = vld [vmem:[%s2113_s4 + $0x38] sm:$0xff] }
  0x1e   :  { %1618 = vmatprep.subr.bf16.mxu0 %v1686_v3  ;;  %v759_v39 = vld [vmem:[%s2113_s4 + $0x28] sm:$0xff]  ;;  %v760_v43 = vld [vmem:[%s2113_s4 + $0x30] sm:$0xff]  ;;  %v762_v50 = vld [vmem:[%s2113_s4 + $0x40] sm:$0xff] }
  0x1f   :  { %590 = vmatprep.mubr.bf16.mxu1 %v503_v27  ;;  %v763_v49 = vld [vmem:[%s2113_s4 + $0x48] sm:$0xff]  ;;  %v765_v52 = vld [vmem:[%s2113_s4 + $0x58] sm:$0xff]  ;;  %v764_v53 = vld [vmem:[%s2113_s4 + $0x50] sm:$0xff] }
  0x20   :  { %835 = vperm.xlu1 %1682, %v757_v32   ;;  %v767_v59 = vld [vmem:[%s2113_s4 + $0x68] sm:$0xff]  ;;  %v766_v60 = vld [vmem:[%s2113_s4 + $0x60] sm:$0xff]  ;;  %v769_v62 = vld [vmem:[%s2113_s4 + $0x78] sm:$0xff] }
  0x21   :  { %1619 = vmatpush3.bf16.msra.mxu0 %v1686_v3  ;;  %825 = vperm.xlu0 %1681, %v755_v33   ;;  %v768_v63 = vld [vmem:[%s2113_s4 + $0x70] sm:$0xff]  ;;  %v779_v27 = vld [vmem:[%s2113_s4 + $0xc8] sm:$0xff]  ;;  %v778_v28 = vld [vmem:[%s2113_s4 + $0xc0] sm:$0xff] }
  0x22   :  { %1620 = vmatprep.subr.bf16.mxu0 %v1687_v5  ;;  %v781_v32 = vld [vmem:[%s2113_s4 + $0xd8] sm:$0xff]  ;;  %v780_v33 = vld [vmem:[%s2113_s4 + $0xd0] sm:$0xff] }
  0x24   :  { %845 = vperm.xlu1 %1682, %v759_v39  }
  0x25   :  { %1621 = vmatpush3.bf16.msra.mxu0 %v1687_v5  ;;  %840 = vperm.xlu0 %1681, %v758_v40   ;;  %v771_v5 = vld [vmem:[%s2113_s4 + $0x88] sm:$0xff] }
  0x26   :  { %1622 = vmatprep.subr.bf16.mxu0 %v1688_v6 }
  0x28   :  { %855 = vperm.xlu1 %1682, %v761_v42   ;;  %v785_v42 = vld [vmem:[%s2113_s4 + $0xf8] sm:$0xff] }
  0x29   :  { %1623 = vmatpush3.bf16.msra.mxu0 %v1688_v6  ;;  %850 = vperm.xlu0 %1681, %v760_v43   ;;  %v770_v6 = vld [vmem:[%s2113_s4 + $0x80] sm:$0xff]  ;;  %v784_v43 = vld [vmem:[%s2113_s4 + $0xf0] sm:$0xff] }
  0x2a   :  { %1624 = vmatprep.subr.bf16.mxu0 %v1689_v7 }
  0x2c   :  { %865 = vperm.xlu1 %1682, %v763_v49  }
  0x2d   :  { %1625 = vmatpush3.bf16.msra.mxu0 %v1689_v7  ;;  %860 = vperm.xlu0 %1681, %v762_v50  }
  0x2e   :  { %1626 = vmatprep.subr.bf16.mxu0 %v1690_v8 }
  0x30   :  { %875 = vperm.xlu1 %1682, %v765_v52   ;;  %v497_v52 = vunpack.c.h.s8.bf16 %v1856_v24  ;;  %v480_v24 = vld [vmem:[%s2109_s0 + $0x10] sm:$0xff] }
  0x31   :  { %1627 = vmatpush3.bf16.msra.mxu0 %v1690_v8  ;;  %870 = vperm.xlu0 %1681, %v764_v53   ;;  %v773_v8 = vld [vmem:[%s2113_s4 + $0x98] sm:$0xff] }
  0x32   :  { %v481_v53 = vld [vmem:[%s2109_s0 + $0x18] sm:$0xff] }
  0x34   :  { %1629 = vmatmul.mubr.bf16.vlgmr.msra.gmra.mrb[0].mxu0 %v1692_v9  ;;  %885 = vperm.xlu1 %1682, %v767_v59   ;;  %v772_v9 = vld [vmem:[%s2113_s4 + $0x90] sm:$0xff]  ;;  %v498_v59 = vunpack.c.l.s8.bf16 %v480_v24 }
  0x35   :  { %1632 = vmatprep.mubr.bf16.mxu0 %v1693_v10  ;;  %880 = vperm.xlu0 %1681, %v766_v60  }
  0x38   :  { %895 = vperm.xlu1 %1682, %v769_v62  }
  0x39   :  { %890 = vperm.xlu0 %1681, %v768_v63   ;;  %v487_v63 = vld [vmem:[%s2109_s0 + $0x48] sm:$0xff] }
  0x3c   :  { %1633 = vmatmul.mubr.bf16.gmra.mrb[4].mxu0 %v1694_v11  ;;  %905 = vperm.xlu1 %1682, %v771_v5   ;;  %v513_v5 = vunpack.c.h.s8.bf16 %v487_v63 }
  0x3d   :  { %1636 = vmatprep.mubr.bf16.mxu0 %v1695_v12  ;;  %900 = vperm.xlu0 %1681, %v770_v6   ;;  %v489_v6 = vld [vmem:[%s2109_s0 + $0x58] sm:$0xff] }
  0x40   :  { %915 = vperm.xlu1 %1682, %v773_v8   ;;  %v515_v8 = vunpack.c.l.s8.bf16 %v489_v6 }
  0x41   :  { %910 = vperm.xlu0 %1681, %v772_v9   ;;  %v488_v9 = vld [vmem:[%s2109_s0 + $0x50] sm:$0xff] }
  0x44   :  { %1637 = vmatmul.mubr.bf16.gmra.mrb[8].mxu0 %v1696_v13 }
  0x45   :  { %1640 = vmatprep.mubr.bf16.mxu0 %v1697_v14 }
  0x4c   :  { %1641 = vmatmul.mubr.bf16.gmra.mrb[12].mxu0 %v1698_v15  ;;  %v775_v15 = vld [vmem:[%s2113_s4 + $0xa8] sm:$0xff] }
  0x4d   :  { %1644 = vmatprep.mubr.bf16.mxu0 %v1699_v16  ;;  %v774_v16 = vld [vmem:[%s2113_s4 + $0xa0] sm:$0xff]  ;;  %925 = vperm.xlu1 %1682, %v775_v15  }
  0x4e   :  { %920 = vperm.xlu0 %1681, %v774_v16   ;;  %v490_v15 = vld [vmem:[%s2109_s0 + $0x60] sm:$0xff] }
  0x4f   :  { %v518_v16 = vunpack.c.l.s8.bf16 %v490_v15 }
  0x54   :  { %1645 = vmatmul.mubr.bf16.gmra.mrb[16].mxu0 %v1700_v17 }
  0x55   :  { %1648 = vmatprep.mubr.bf16.mxu0 %v1701_v18 }
  0x5c   :  { %1649 = vmatmul.mubr.bf16.gmra.mrb[20].mxu0 %v1702_v19 }
  0x5d   :  { %1652 = vmatprep.mubr.bf16.mxu0 %v1703_v20  ;;  %v777_v20 = vld [vmem:[%s2113_s4 + $0xb8] sm:$0xff] }
  0x5e   :  { %935 = vperm.xlu1 %1682, %v777_v20  }
  0x62   :  { %945 = vperm.xlu1 %1682, %v779_v27  }
  0x64   :  { %1653 = vmatmul.mubr.bf16.gmra.mrb[24].mxu0 %v1704_v21  ;;  %v776_v21 = vld [vmem:[%s2113_s4 + $0xb0] sm:$0xff] }
  0x65   :  { %1656 = vmatprep.mubr.bf16.mxu0 %v1705_v22  ;;  %930 = vperm.xlu0 %1681, %v776_v21   ;;  %v492_v21 = vld [vmem:[%s2109_s0 + $0x70] sm:$0xff] }
  0x66   :  { %955 = vperm.xlu1 %1682, %v781_v32  }
  0x69   :  { %940 = vperm.xlu0 %1681, %v778_v28  }
  0x6c   :  { %1657 = vmatmul.mubr.bf16.gmra.mrb[28].mxu0 %v1706_v23 }
  0x6d   :  { %558 = vmatprep.mubr.bf16.mxu0 %v495_v26  ;;  %950 = vperm.xlu0 %1681, %v780_v33  }
  0x9b   :  { %v2033_v28 = vpop.permute.xlu1 %830 }
  0x9c   :  { %v821_v27 = vpop.permute.xlu0 %820 }
 0x107   :  { %v1630_v31 = vpop.f32.mrb[0].mxu0 }
 0x108   :  { %v303_v34 = vpop.f32.mrb[1].mxu0 }
 0x109   :  { %v1631_v35 = vpop.f32.mrb[2].mxu0 }
 0x10a   :  { %v1877_v36 = vpack.c.bf16 %v1631_v35, %v1630_v31  ;;  %v306_v37 = vpop.f32.mrb[3].mxu0 }
 0x10b   :  { %v430_v38 = vpack.c.bf16 %v306_v37, %v303_v34  ;;  %v783_v37 = vld [vmem:[%s2113_s4 + $0xe8] sm:$0xff] }
 0x10c   :  { %965 = vperm.xlu1 %1682, %v783_v37  }
 0x10f   :  { %v1634_v41 = vpop.f32.mrb[4].mxu0 }
 0x110   :  { %v319_v44 = vpop.f32.mrb[5].mxu0  ;;  %975 = vperm.xlu1 %1682, %v785_v42  }
 0x111   :  { %v1635_v45 = vpop.f32.mrb[6].mxu0 }
 0x112   :  { %v1891_v46 = vpack.c.bf16 %v1635_v45, %v1634_v41  ;;  %v322_v47 = vpop.f32.mrb[7].mxu0 }
 0x113   :  { %v1893_v48 = vpack.c.bf16 %v322_v47, %v319_v44  ;;  %v478_v47 = vld [vmem:[%s2109_s0] sm:$0xff] }
 0x114   :  { %v494_v49 = vunpack.c.l.s8.bf16 %v478_v47 }
 0x117   :  { %v1638_v51 = vpop.f32.mrb[8].mxu0 }
 0x118   :  { %v335_v54 = vpop.f32.mrb[9].mxu0 }
 0x119   :  { %v1639_v55 = vpop.f32.mrb[10].mxu0 }
 0x11a   :  { %v1907_v56 = vpack.c.bf16 %v1639_v55, %v1638_v51  ;;  %v338_v57 = vpop.f32.mrb[11].mxu0  ;;  %v505_v51 = vunpack.c.h.s8.bf16 %v1861_v25  ;;  %v496_v55 = vunpack.c.h.s8.bf16 %v478_v47  ;;  %v484_v25 = vld [vmem:[%s2109_s0 + $0x30] sm:$0xff] }
 0x11b   :  { %v1909_v58 = vpack.c.bf16 %v338_v57, %v335_v54  ;;  %v485_v54 = vld [vmem:[%s2109_s0 + $0x38] sm:$0xff]  ;;  %v499_v57 = vunpack.c.l.s8.bf16 %v481_v53  ;;  %v506_v60 = vunpack.c.l.s8.bf16 %v484_v25 }
 0x11c   :  { %v509_v62 = vunpack.c.h.s8.bf16 %v485_v54 }
 0x11f   :  { %v1642_v61 = vpop.f32.mrb[12].mxu0 }
 0x120   :  { %v351_v0 = vpop.f32.mrb[13].mxu0 }
 0x121   :  { %v1643_v1 = vpop.f32.mrb[14].mxu0 }
 0x122   :  { %v1923_v2 = vpack.c.bf16 %v1643_v1, %v1642_v61  ;;  %v354_v3 = vpop.f32.mrb[15].mxu0  ;;  %v501_v61 = vunpack.c.h.s8.bf16 %v481_v53  ;;  %v508_v1 = vunpack.c.h.s8.bf16 %v484_v25 }
 0x123   :  { %v1925_v4 = vpack.c.bf16 %v354_v3, %v351_v0  ;;  %v500_v0 = vunpack.c.h.s8.bf16 %v480_v24  ;;  %v486_v3 = vld [vmem:[%s2109_s0 + $0x40] sm:$0xff] }
 0x127   :  { %v1646_v7 = vpop.f32.mrb[16].mxu0 }
 0x128   :  { %v367_v10 = vpop.f32.mrb[17].mxu0 }
 0x129   :  { %v1647_v11 = vpop.f32.mrb[18].mxu0 }
 0x12a   :  { %v439_v12 = vpack.c.bf16 %v1647_v11, %v1646_v7  ;;  %v370_v13 = vpop.f32.mrb[19].mxu0  ;;  %v512_v7 = vunpack.c.h.s8.bf16 %v486_v3  ;;  %v517_v11 = vunpack.c.h.s8.bf16 %v489_v6 }
 0x12b   :  { %v438_v14 = vpack.c.bf16 %v370_v13, %v367_v10  ;;  %v514_v10 = vunpack.c.l.s8.bf16 %v488_v9  ;;  %v516_v13 = vunpack.c.h.s8.bf16 %v488_v9 }
 0x12d   :  { %1500 = vmatprep.subr.bf16.mxu0 %v438_v14  ;;  %1660 = vmatprep.subr.bf16.mxu1 %v438_v14 }
 0x12e   :  { %1501 = vmatpush3.bf16.msra.mxu0 %v430_v38  ;;  %1668 = vmatpush3.bf16.msra.mxu1 %v430_v38  ;;  %v782_v38 = vld [vmem:[%s2113_s4 + $0xe0] sm:$0xff] }
 0x12f   :  { %v1650_v17 = vpop.f32.mrb[20].mxu0  ;;  %1502 = vmatprep.subr.bf16.mxu0 %v439_v12  ;;  %1661 = vmatprep.subr.bf16.mxu1 %v439_v12  ;;  %v491_v12 = vld [vmem:[%s2109_s0 + $0x68] sm:$0xff] }
 0x130   :  { %v383_v18 = vpop.f32.mrb[21].mxu0  ;;  %960 = vperm.xlu0 %1681, %v782_v38   ;;  %v519_v14 = vunpack.c.l.s8.bf16 %v491_v12 }
 0x131   :  { %v1651_v19 = vpop.f32.mrb[22].mxu0 }
 0x132   :  { %v441_v22 = vpack.c.bf16 %v1651_v19, %v1650_v17  ;;  %v386_v23 = vpop.f32.mrb[23].mxu0  ;;  %1503 = vmatpush3.bf16.msra.mxu0 %v1877_v36  ;;  %1669 = vmatpush3.bf16.msra.mxu1 %v1877_v36  ;;  %v521_v17 = vunpack.c.h.s8.bf16 %v491_v12  ;;  %v520_v19 = vunpack.c.h.s8.bf16 %v490_v15 }
 0x133   :  { %v440_v26 = vpack.c.bf16 %v386_v23, %v383_v18  ;;  %v493_v18 = vld [vmem:[%s2109_s0 + $0x78] sm:$0xff] }
 0x134   :  { %970 = vperm.xlu0 %1681, %v784_v43   ;;  %v523_v20 = vunpack.c.l.s8.bf16 %v493_v18  ;;  %v525_v23 = vunpack.c.h.s8.bf16 %v493_v18 }
 0x135   :  { %1504 = vmatprep.subr.bf16.mxu0 %v440_v26  ;;  %1662 = vmatprep.subr.bf16.mxu1 %v440_v26  ;;  %v524_v26 = vunpack.c.h.s8.bf16 %v492_v21 }
 0x136   :  { %1505 = vmatpush3.bf16.msra.mxu0 %v1893_v48  ;;  %1670 = vmatpush3.bf16.msra.mxu1 %v1893_v48  ;;  %v482_v48 = vld [vmem:[%s2109_s0 + $0x20] sm:$0xff] }
 0x137   :  { %v1654_v29 = vpop.f32.mrb[24].mxu0  ;;  %1506 = vmatprep.subr.bf16.mxu0 %v441_v22  ;;  %1663 = vmatprep.subr.bf16.mxu1 %v441_v22  ;;  %v502_v50 = vunpack.c.l.s8.bf16 %v482_v48  ;;  %v522_v22 = vunpack.c.l.s8.bf16 %v492_v21 }
 0x138   :  { %v399_v30 = vpop.f32.mrb[25].mxu0 }
 0x139   :  { %v1655_v31 = vpop.f32.mrb[26].mxu0 }
 0x13a   :  { %v443_v34 = vpack.c.bf16 %v1655_v31, %v1654_v29  ;;  %v402_v35 = vpop.f32.mrb[27].mxu0  ;;  %1507 = vmatpush3.bf16.msra.mxu0 %v1891_v46  ;;  %1671 = vmatpush3.bf16.msra.mxu1 %v1891_v46  ;;  %v826_v29 = vpop.permute.xlu0 %825 }
 0x13b   :  { %v442_v36 = vpack.c.bf16 %v402_v35, %v399_v30  ;;  %v2035_v30 = vpop.permute.xlu1 %835 }
 0x13d   :  { %1508 = vmatprep.subr.bf16.mxu0 %v442_v36  ;;  %1664 = vmatprep.subr.bf16.mxu1 %v442_v36 }
 0x13e   :  { %1509 = vmatpush3.bf16.msra.mxu0 %v1909_v58  ;;  %1672 = vmatpush3.bf16.msra.mxu1 %v1909_v58  ;;  %v507_v58 = vunpack.c.l.s8.bf16 %v485_v54  ;;  %v2037_v31 = vpop.permute.xlu0 %840 }
 0x13f   :  { %v1658_v39 = vpop.f32.mrb[28].mxu0  ;;  %1510 = vmatprep.subr.bf16.mxu0 %v443_v34  ;;  %1665 = vmatprep.subr.bf16.mxu1 %v443_v34  ;;  %v2039_v32 = vpop.permute.xlu1 %845 }
 0x140   :  { %v415_v40 = vpop.f32.mrb[29].mxu0 }
 0x141   :  { %v1659_v41 = vpop.f32.mrb[30].mxu0 }
 0x142   :  { %v445_v44 = vpack.c.bf16 %v1659_v41, %v1658_v39  ;;  %v418_v45 = vpop.f32.mrb[31].mxu0  ;;  %1511 = vmatpush3.bf16.msra.mxu0 %v1907_v56  ;;  %1673 = vmatpush3.bf16.msra.mxu1 %v1907_v56  ;;  %v504_v56 = vunpack.c.h.s8.bf16 %v482_v48  ;;  %v2041_v33 = vpop.permute.xlu0 %850 }
 0x143   :  { %v444_v46 = vpack.c.bf16 %v418_v45, %v415_v40  ;;  %v2043_v34 = vpop.permute.xlu1 %855 }
 0x145   :  { %1512 = vmatprep.subr.bf16.mxu0 %v444_v46  ;;  %1666 = vmatprep.subr.bf16.mxu1 %v444_v46 }
 0x146   :  { %1513 = vmatpush3.bf16.msra.mxu0 %v1925_v4  ;;  %1674 = vmatpush3.bf16.msra.mxu1 %v1925_v4  ;;  %v510_v4 = vunpack.c.l.s8.bf16 %v486_v3  ;;  %v861_v35 = vpop.permute.xlu0 %860 }
 0x147   :  { %1514 = vmatprep.subr.bf16.mxu0 %v445_v44  ;;  %1667 = vmatprep.subr.bf16.mxu1 %v445_v44  ;;  %v2048_v44 = vld [vmem:[%s2112_s3] ss:$0 sm:$0xff]  ;;  %s1759_s3 = smov [#allocation6]  }
 0x148   :  { %s1278_s9 = sshll.u32 %s1759_s3, 4  ;;  %s1279_s9 = int_to_ptr.vmem [resolvable:$true] %s1278_s9 }
 0x149   :  { %s1729_s10 = scalar_lea.vmem %s1279_s9, 2048  ;;  %p1734_p9 = scmp.lt.s32.totalorder %s1279_s9, %s1279_s9 }
 0x14a   :  { %1515 = vmatpush3.bf16.msra.mxu0 %v1923_v2  ;;  %1675 = vmatpush3.bf16.msra.mxu1 %v1923_v2  ;;  %v511_v2 = vunpack.c.l.s8.bf16 %v487_v63  ;;  %p1730_p8 = scmp.ne.s32.totalorder %s1279_s9, %s1729_s10  ;;  %p1735_p10 = scmp.lt.s32.totalorder %s1729_s10, %s1729_s10 }
 0x14c   :  { %p1736_p11 = por %p1735_p10, %p1734_p9 }
 0x14d   :  { %559 = vmatmul.mubr.bf16.vlgmr.msra.gmra.mrb[32].mxu0 %v494_v49  ;;  %591 = vmatmul.mubr.bf16.vlgmr.msra.gmra.mrb[0].mxu1 %v502_v50 }
 0x14e   :  { %566 = vmatprep.mubr.bf16.mxu0 %v497_v52  ;;  %598 = vmatprep.mubr.bf16.mxu1 %v505_v51  ;;  %v866_v51 = vpop.permute.xlu1 %865  ;;  %p1737_p12 = pnand %p1736_p11, %p1730_p8 }
 0x155   :  { %567 = vmatmul.mubr.bf16.gmra.mrb[36].mxu0 %v496_v55  ;;  %599 = vmatmul.mubr.bf16.gmra.mrb[4].mxu1 %v504_v56  ;;  %v871_v56 = vpop.permute.xlu0 %870 }
 0x156   :  { %574 = vmatprep.mubr.bf16.mxu0 %v499_v57  ;;  %606 = vmatprep.mubr.bf16.mxu1 %v507_v58 }
 0x15d   :  { %575 = vmatmul.mubr.bf16.gmra.mrb[40].mxu0 %v498_v59  ;;  %607 = vmatmul.mubr.bf16.gmra.mrb[8].mxu1 %v506_v60 }
 0x15e   :  { %582 = vmatprep.mubr.bf16.mxu0 %v501_v61  ;;  %614 = vmatprep.mubr.bf16.mxu1 %v509_v62 }
 0x165   :  { %583 = vmatmul.mubr.bf16.gmra.mrb[44].mxu0 %v500_v0  ;;  %615 = vmatmul.mubr.bf16.gmra.mrb[12].mxu1 %v508_v1 }
 0x166   :  { %622 = vmatprep.mubr.bf16.mxu1 %v511_v2 }
 0x16d   :  { %623 = vmatmul.mubr.bf16.gmra.mrb[16].mxu1 %v510_v4 }
 0x16e   :  { %630 = vmatprep.mubr.bf16.mxu1 %v513_v5 }
 0x175   :  { %631 = vmatmul.mubr.bf16.gmra.mrb[20].mxu1 %v512_v7 }
 0x176   :  { %638 = vmatprep.mubr.bf16.mxu1 %v515_v8 }
 0x17d   :  { %639 = vmatmul.mubr.bf16.gmra.mrb[24].mxu1 %v514_v10 }
 0x17e   :  { %646 = vmatprep.mubr.bf16.mxu1 %v517_v11 }
 0x185   :  { %647 = vmatmul.mubr.bf16.gmra.mrb[28].mxu1 %v516_v13  ;;  %v876_v13 = vpop.permute.xlu1 %875 }
 0x186   :  { %654 = vmatprep.mubr.bf16.mxu1 %v519_v14 }
 0x18d   :  { %655 = vmatmul.mubr.bf16.gmra.mrb[32].mxu1 %v518_v16 }
 0x18e   :  { %662 = vmatprep.mubr.bf16.mxu1 %v521_v17 }
 0x195   :  { %663 = vmatmul.mubr.bf16.gmra.mrb[36].mxu1 %v520_v19 }
 0x196   :  { %670 = vmatprep.mubr.bf16.mxu1 %v523_v20  ;;  %v881_v20 = vpop.permute.xlu0 %880 }
 0x19d   :  { %671 = vmatmul.mubr.bf16.gmra.mrb[40].mxu1 %v522_v22 }
 0x19e   :  { %678 = vmatprep.mubr.bf16.mxu1 %v525_v23 }
 0x1a5   :  { %679 = vmatmul.mubr.bf16.gmra.mrb[44].mxu1 %v524_v26 }
 0x220   :  { %v1540_v36 = vpop.f32.mrb[0].mxu1  ;;  %v1516_v37 = vpop.f32.mrb[32].mxu0 }
 0x221   :  { %v1541_v38 = vpop.f32.mrb[1].mxu1  ;;  %v1517_v39 = vpop.f32.mrb[33].mxu0 }
 0x222   :  { %v1542_v40 = vadd.f32 %v1541_v38, %v1540_v36  ;;  %v1543_v41 = vpop.f32.mrb[2].mxu1  ;;  %v1518_v42 = vadd.f32 %v1517_v39, %v1516_v37  ;;  %v1519_v43 = vpop.f32.mrb[34].mxu0 }
 0x223   :  { %v1544_v45 = vpop.f32.mrb[3].mxu1  ;;  %v1520_v46 = vpop.f32.mrb[35].mxu0 }
 0x224   :  { %v986_v47 = vmul.f32 %v1542_v40, %v861_v35  ;;  %v1545_v48 = vadd.f32 %v1544_v45, %v1543_v41  ;;  %v978_v49 = vmul.f32 %v1518_v42, %v821_v27  ;;  %v1521_v50 = vadd.f32 %v1520_v46, %v1519_v43 }
 0x226   :  { %v1025_v52 = vadd.f32 %v2048_v44, %v986_v47  ;;  %v987_v53 = vmul.f32 %v1545_v48, %v866_v51  ;;  %v1017_v54 = vadd.f32 %v2048_v44, %v978_v49  ;;  %v979_v55 = vmul.f32 %v1521_v50, %v826_v29 }
 0x228   :  { %v1057_v57 = vmax.f32 %v1025_v52, 0.0  ;;  %v1026_v58 = vadd.f32 %v2048_v44, %v987_v53  ;;  %v1546_v24 = vpop.f32.mrb[4].mxu1  ;;  %v1049_v25 = vmax.f32 %v1017_v54, 0.0  ;;  %v1018_v59 = vadd.f32 %v2048_v44, %v979_v55  ;;  %v1522_v60 = vpop.f32.mrb[36].mxu0 }
 0x229   :  { %v1547_v61 = vpop.f32.mrb[5].mxu1  ;;  %v1523_v62 = vpop.f32.mrb[37].mxu0 }
 0x22a   :  { %v1058_v63 = vmax.f32 %v1026_v58, 0.0  ;;  %v1548_v0 = vadd.f32 %v1547_v61, %v1546_v24  ;;  %v1549_v1 = vpop.f32.mrb[6].mxu1  ;;  %v1525_v2 = vpop.f32.mrb[38].mxu0  ;;  %v1089_v3 = vmul.f32 %v1057_v57, %v861_v35  ;;  %v1081_v5 = vmul.f32 %v1049_v25, %v821_v27 }
 0x22b   :  { %v1550_v4 = vpop.f32.mrb[7].mxu1  ;;  %v1050_v6 = vmax.f32 %v1018_v59, 0.0  ;;  %v1524_v7 = vadd.f32 %v1523_v62, %v1522_v60  ;;  %v1526_v8 = vpop.f32.mrb[39].mxu0 }
 0x22c   :  { %v1090_v9 = vmul.f32 %v1058_v63, %v866_v51  ;;  %v988_v10 = vmul.f32 %v1548_v0, %v871_v56  ;;  %v1551_v11 = vadd.f32 %v1550_v4, %v1549_v1  ;;  %v1527_v12 = vadd.f32 %v1526_v8, %v1525_v2  ;;  %v886_v54 = vpop.permute.xlu1 %885 }
 0x22d   :  { %v1082_v14 = vmul.f32 %v1050_v6, %v826_v29  ;;  %v980_v15 = vmul.f32 %v1524_v7, %v2033_v28 }
 0x22e   :  { %v1404_v16 = vpack.c.bf16 %v1090_v9, %v1089_v3  ;;  %v1027_v17 = vadd.f32 %v2048_v44, %v988_v10  ;;  %v989_v18 = vmul.f32 %v1551_v11, %v876_v13  ;;  %v981_v19 = vmul.f32 %v1527_v12, %v2035_v30 }
 0x22f   :  { %v1384_v21 = vpack.c.bf16 %v1082_v14, %v1081_v5  ;;  %v1019_v22 = vadd.f32 %v2048_v44, %v980_v15 }
 0x230   :  { %1464 = vst [vmem:[#allocation6 + $0x20] sm:$0xff] %v1404_v16   ;;  %v1059_v23 = vmax.f32 %v1027_v17, 0.0  ;;  %v1028_v26 = vadd.f32 %v2048_v44, %v989_v18  ;;  %v1552_v27 = vpop.f32.mrb[8].mxu1  ;;  %v1020_v35 = vadd.f32 %v2048_v44, %v981_v19  ;;  %v1528_v29 = vpop.f32.mrb[40].mxu0 }
 0x231   :  { %1385 = vst [vmem:[#allocation6] sm:$0xff] %v1384_v21   ;;  %v1051_v36 = vmax.f32 %v1019_v22, 0.0  ;;  %v1553_v37 = vpop.f32.mrb[9].mxu1  ;;  %v1529_v38 = vpop.f32.mrb[41].mxu0 }
 0x232   :  { %v1060_v39 = vmax.f32 %v1028_v26, 0.0  ;;  %v1554_v40 = vadd.f32 %v1553_v37, %v1552_v27  ;;  %v1555_v41 = vpop.f32.mrb[10].mxu1  ;;  %v1052_v42 = vmax.f32 %v1020_v35, 0.0  ;;  %v1531_v43 = vpop.f32.mrb[42].mxu0  ;;  %v1091_v45 = vmul.f32 %v1059_v23, %v871_v56 }
 0x233   :  { %v1083_v46 = vmul.f32 %v1051_v36, %v2033_v28  ;;  %v1556_v47 = vpop.f32.mrb[11].mxu1  ;;  %v1530_v48 = vadd.f32 %v1529_v38, %v1528_v29  ;;  %v1532_v49 = vpop.f32.mrb[43].mxu0 }
 0x234   :  { %v1092_v50 = vmul.f32 %v1060_v39, %v876_v13  ;;  %v990_v51 = vmul.f32 %v1554_v40, %v881_v20  ;;  %v1084_v52 = vmul.f32 %v1052_v42, %v2035_v30  ;;  %v1557_v53 = vadd.f32 %v1556_v47, %v1555_v41  ;;  %v891_v56 = vpop.permute.xlu0 %890  ;;  %v896_v21 = vpop.permute.xlu1 %895 }
 0x235   :  { %v982_v55 = vmul.f32 %v1530_v48, %v2037_v31  ;;  %v1533_v57 = vadd.f32 %v1532_v49, %v1531_v43 }
 0x236   :  { %v1409_v58 = vpack.c.bf16 %v1092_v50, %v1091_v45  ;;  %v1029_v24 = vadd.f32 %v2048_v44, %v990_v51  ;;  %v1389_v25 = vpack.c.bf16 %v1084_v52, %v1083_v46  ;;  %v991_v59 = vmul.f32 %v1557_v53, %v886_v54 }
 0x237   :  { %v1021_v28 = vadd.f32 %v2048_v44, %v982_v55  ;;  %v983_v60 = vmul.f32 %v1533_v57, %v2039_v32 }
 0x238   :  { %1465 = vst [vmem:[#allocation6 + $0x28] sm:$0xff] %v1409_v58   ;;  %v1061_v61 = vmax.f32 %v1029_v24, 0.0  ;;  %1461 = vst [vmem:[#allocation6 + $0x8] sm:$0xff] %v1389_v25   ;;  %v1030_v30 = vadd.f32 %v2048_v44, %v991_v59  ;;  %v1534_v62 = vpop.f32.mrb[44].mxu0  ;;  %v1558_v63 = vpop.f32.mrb[12].mxu1 }
 0x239   :  { %v1053_v0 = vmax.f32 %v1021_v28, 0.0  ;;  %v1022_v1 = vadd.f32 %v2048_v44, %v983_v60  ;;  %v1535_v2 = vpop.f32.mrb[45].mxu0  ;;  %v1559_v3 = vpop.f32.mrb[13].mxu1 }
 0x23a   :  { %v1062_v4 = vmax.f32 %v1030_v30, 0.0  ;;  %v1536_v5 = vadd.f32 %v1535_v2, %v1534_v62  ;;  %v1560_v6 = vadd.f32 %v1559_v3, %v1558_v63  ;;  %v1537_v7 = vpop.f32.mrb[46].mxu0  ;;  %v1561_v8 = vpop.f32.mrb[14].mxu1  ;;  %v1093_v9 = vmul.f32 %v1061_v61, %v881_v20 }
 0x23b   :  { %v1085_v10 = vmul.f32 %v1053_v0, %v2037_v31  ;;  %v1054_v11 = vmax.f32 %v1022_v1, 0.0  ;;  %v1538_v12 = vpop.f32.mrb[47].mxu0  ;;  %v1562_v13 = vpop.f32.mrb[15].mxu1 }
 0x23c   :  { %v1094_v14 = vmul.f32 %v1062_v4, %v886_v54  ;;  %v984_v15 = vmul.f32 %v1536_v5, %v2041_v33  ;;  %v992_v16 = vmul.f32 %v1560_v6, %v891_v56  ;;  %v1539_v17 = vadd.f32 %v1538_v12, %v1537_v7  ;;  %v901_v42 = vpop.permute.xlu0 %900  ;;  %v906_v50 = vpop.permute.xlu1 %905 }
 0x23d   :  { %v1086_v18 = vmul.f32 %v1054_v11, %v2039_v32  ;;  %v1563_v19 = vadd.f32 %v1562_v13, %v1561_v8 }
 0x23e   :  { %v1414_v22 = vpack.c.bf16 %v1094_v14, %v1093_v9  ;;  %v1023_v23 = vadd.f32 %v2048_v44, %v984_v15  ;;  %v1031_v26 = vadd.f32 %v2048_v44, %v992_v16  ;;  %v985_v20 = vmul.f32 %v1539_v17, %v2043_v34 }
 0x23f   :  { %v1394_v31 = vpack.c.bf16 %v1086_v18, %v1085_v10  ;;  %v993_v27 = vmul.f32 %v1563_v19, %v896_v21 }
 0x240   :  { %1466 = vst [vmem:[#allocation6 + $0x30] sm:$0xff] %v1414_v22   ;;  %v1055_v35 = vmax.f32 %v1023_v23, 0.0  ;;  %v1024_v29 = vadd.f32 %v2048_v44, %v985_v20  ;;  %v1564_v36 = vpop.f32.mrb[16].mxu1  ;;  %v1063_v37 = vmax.f32 %v1031_v26, 0.0  ;;  %v911_v60 = vpop.permute.xlu0 %910 }
 0x241   :  { %1462 = vst [vmem:[#allocation6 + $0x10] sm:$0xff] %v1394_v31   ;;  %v1032_v32 = vadd.f32 %v2048_v44, %v993_v27  ;;  %v1565_v38 = vpop.f32.mrb[17].mxu1  ;;  %v916_v0 = vpop.permute.xlu1 %915 }
 0x242   :  { %v1056_v39 = vmax.f32 %v1024_v29, 0.0  ;;  %v1566_v40 = vadd.f32 %v1565_v38, %v1564_v36  ;;  %v1567_v41 = vpop.f32.mrb[18].mxu1  ;;  %v1087_v46 = vmul.f32 %v1055_v35, %v2041_v33  ;;  %v1095_v51 = vmul.f32 %v1063_v37, %v891_v56 }
 0x243   :  { %v1064_v43 = vmax.f32 %v1032_v32, 0.0  ;;  %v1568_v45 = vpop.f32.mrb[19].mxu1 }
 0x244   :  { %v1088_v47 = vmul.f32 %v1056_v39, %v2043_v34  ;;  %v994_v48 = vmul.f32 %v1566_v40, %v901_v42  ;;  %v1569_v49 = vadd.f32 %v1568_v45, %v1567_v41  ;;  %v921_v11 = vpop.permute.xlu0 %920 }
 0x245   :  { %v1096_v52 = vmul.f32 %v1064_v43, %v896_v21  ;;  %v926_v17 = vpop.permute.xlu1 %925 }
 0x246   :  { %v1399_v53 = vpack.c.bf16 %v1088_v47, %v1087_v46  ;;  %v1033_v54 = vadd.f32 %v2048_v44, %v994_v48  ;;  %v995_v55 = vmul.f32 %v1569_v49, %v906_v50 }
 0x247   :  { %v1419_v57 = vpack.c.bf16 %v1096_v52, %v1095_v51 }
 0x248   :  { %1463 = vst [vmem:[#allocation6 + $0x18] sm:$0xff] %v1399_v53   ;;  %v1065_v58 = vmax.f32 %v1033_v54, 0.0  ;;  %v1034_v24 = vadd.f32 %v2048_v44, %v995_v55  ;;  %v1570_v25 = vpop.f32.mrb[20].mxu1  ;;  %v931_v29 = vpop.permute.xlu0 %930 }
 0x249   :  { %1467 = vst [vmem:[#allocation6 + $0x38] sm:$0xff] %v1419_v57   ;;  %v1571_v59 = vpop.f32.mrb[21].mxu1  ;;  %v936_v40 = vpop.permute.xlu1 %935 }
 0x24a   :  { %v1066_v33 = vmax.f32 %v1034_v24, 0.0  ;;  %v1572_v28 = vadd.f32 %v1571_v59, %v1570_v25  ;;  %v1573_v34 = vpop.f32.mrb[22].mxu1  ;;  %v1097_v30 = vmul.f32 %v1065_v58, %v901_v42 }
 0x24b   :  { %v1574_v61 = vpop.f32.mrb[23].mxu1 }
 0x24c   :  { %v1098_v56 = vmul.f32 %v1066_v33, %v906_v50  ;;  %v996_v62 = vmul.f32 %v1572_v28, %v911_v60  ;;  %v1575_v63 = vadd.f32 %v1574_v61, %v1573_v34  ;;  %v941_v52 = vpop.permute.xlu0 %940 }
 0x24d   :  { %v946_v24 = vpop.permute.xlu1 %945 }
 0x24e   :  { %v1424_v1 = vpack.c.bf16 %v1098_v56, %v1097_v30  ;;  %v1035_v2 = vadd.f32 %v2048_v44, %v996_v62  ;;  %v997_v3 = vmul.f32 %v1575_v63, %v916_v0 }
 0x250   :  { %1468 = vst [vmem:[#allocation6 + $0x40] sm:$0xff] %v1424_v1   ;;  %v1067_v4 = vmax.f32 %v1035_v2, 0.0  ;;  %v1036_v5 = vadd.f32 %v2048_v44, %v997_v3  ;;  %v1576_v6 = vpop.f32.mrb[24].mxu1  ;;  %v951_v63 = vpop.permute.xlu0 %950 }
 0x251   :  { %v1577_v7 = vpop.f32.mrb[25].mxu1 }
 0x252   :  { %v1068_v8 = vmax.f32 %v1036_v5, 0.0  ;;  %v1578_v9 = vadd.f32 %v1577_v7, %v1576_v6  ;;  %v1579_v10 = vpop.f32.mrb[26].mxu1  ;;  %v1099_v13 = vmul.f32 %v1067_v4, %v911_v60  ;;  %v956_v5 = vpop.permute.xlu1 %955 }
 0x253   :  { %v1580_v12 = vpop.f32.mrb[27].mxu1 }
 0x254   :  { %v1100_v14 = vmul.f32 %v1068_v8, %v916_v0  ;;  %v998_v15 = vmul.f32 %v1578_v9, %v921_v11  ;;  %v1581_v16 = vadd.f32 %v1580_v12, %v1579_v10 }
 0x256   :  { %v1429_v18 = vpack.c.bf16 %v1100_v14, %v1099_v13  ;;  %v1037_v19 = vadd.f32 %v2048_v44, %v998_v15  ;;  %v999_v21 = vmul.f32 %v1581_v16, %v926_v17  ;;  %v961_v16 = vpop.permute.xlu0 %960 }
 0x258   :  { %1469 = vst [vmem:[#allocation6 + $0x48] sm:$0xff] %v1429_v18   ;;  %v1069_v22 = vmax.f32 %v1037_v19, 0.0  ;;  %v1038_v23 = vadd.f32 %v2048_v44, %v999_v21  ;;  %v1582_v26 = vpop.f32.mrb[28].mxu1 }
 0x259   :  { %v1583_v20 = vpop.f32.mrb[29].mxu1 }
 0x25a   :  { %v1070_v31 = vmax.f32 %v1038_v23, 0.0  ;;  %v1584_v27 = vadd.f32 %v1583_v20, %v1582_v26  ;;  %v1585_v35 = vpop.f32.mrb[30].mxu1  ;;  %v1101_v37 = vmul.f32 %v1069_v22, %v921_v11  ;;  %v966_v23 = vpop.permute.xlu1 %965 }
 0x25b   :  { %v1586_v36 = vpop.f32.mrb[31].mxu1 }
 0x25c   :  { %v1102_v32 = vmul.f32 %v1070_v31, %v926_v17  ;;  %v1000_v38 = vmul.f32 %v1584_v27, %v931_v29  ;;  %v1587_v39 = vadd.f32 %v1586_v36, %v1585_v35 }
 0x25e   :  { %v1434_v41 = vpack.c.bf16 %v1102_v32, %v1101_v37  ;;  %v1039_v42 = vadd.f32 %v2048_v44, %v1000_v38  ;;  %v1001_v43 = vmul.f32 %v1587_v39, %v936_v40  ;;  %v971_v39 = vpop.permute.xlu0 %970 }
 0x260   :  { %1470 = vst [vmem:[#allocation6 + $0x50] sm:$0xff] %v1434_v41   ;;  %v1071_v45 = vmax.f32 %v1039_v42, 0.0  ;;  %v1040_v46 = vadd.f32 %v2048_v44, %v1001_v43  ;;  %v1588_v47 = vpop.f32.mrb[32].mxu1 }
 0x261   :  { %v1589_v48 = vpop.f32.mrb[33].mxu1 }
 0x262   :  { %v1072_v49 = vmax.f32 %v1040_v46, 0.0  ;;  %v1590_v50 = vadd.f32 %v1589_v48, %v1588_v47  ;;  %v1591_v51 = vpop.f32.mrb[34].mxu1  ;;  %v1103_v54 = vmul.f32 %v1071_v45, %v931_v29  ;;  %v976_v46 = vpop.permute.xlu1 %975 }
 0x263   :  { %v1592_v53 = vpop.f32.mrb[35].mxu1 }
 0x264   :  { %v1104_v55 = vmul.f32 %v1072_v49, %v936_v40  ;;  %v1002_v57 = vmul.f32 %v1590_v50, %v941_v52  ;;  %v1593_v58 = vadd.f32 %v1592_v53, %v1591_v51 }
 0x266   :  { %v1439_v25 = vpack.c.bf16 %v1104_v55, %v1103_v54  ;;  %v1041_v59 = vadd.f32 %v2048_v44, %v1002_v57  ;;  %v1003_v33 = vmul.f32 %v1593_v58, %v946_v24 }
 0x268   :  { %1471 = vst [vmem:[#allocation6 + $0x58] sm:$0xff] %v1439_v25   ;;  %v1073_v28 = vmax.f32 %v1041_v59, 0.0  ;;  %v1042_v34 = vadd.f32 %v2048_v44, %v1003_v33  ;;  %v1594_v60 = vpop.f32.mrb[36].mxu1 }
 0x269   :  { %v1595_v61 = vpop.f32.mrb[37].mxu1 }
 0x26a   :  { %v1074_v30 = vmax.f32 %v1042_v34, 0.0  ;;  %v1596_v56 = vadd.f32 %v1595_v61, %v1594_v60  ;;  %v1597_v62 = vpop.f32.mrb[38].mxu1  ;;  %v1105_v1 = vmul.f32 %v1073_v28, %v941_v52 }
 0x26b   :  { %v1598_v0 = vpop.f32.mrb[39].mxu1 }
 0x26c   :  { %v1106_v2 = vmul.f32 %v1074_v30, %v946_v24  ;;  %v1004_v3 = vmul.f32 %v1596_v56, %v951_v63  ;;  %v1599_v4 = vadd.f32 %v1598_v0, %v1597_v62 }
 0x26e   :  { %v1444_v6 = vpack.c.bf16 %v1106_v2, %v1105_v1  ;;  %v1043_v7 = vadd.f32 %v2048_v44, %v1004_v3  ;;  %v1005_v8 = vmul.f32 %v1599_v4, %v956_v5 }
 0x270   :  { %1472 = vst [vmem:[#allocation6 + $0x60] sm:$0xff] %v1444_v6   ;;  %v1075_v9 = vmax.f32 %v1043_v7, 0.0  ;;  %v1044_v10 = vadd.f32 %v2048_v44, %v1005_v8  ;;  %v1600_v11 = vpop.f32.mrb[40].mxu1 }
 0x271   :  { %v1601_v12 = vpop.f32.mrb[41].mxu1 }
 0x272   :  { %v1076_v13 = vmax.f32 %v1044_v10, 0.0  ;;  %v1602_v14 = vadd.f32 %v1601_v12, %v1600_v11  ;;  %v1603_v15 = vpop.f32.mrb[42].mxu1  ;;  %v1107_v18 = vmul.f32 %v1075_v9, %v951_v63 }
 0x273   :  { %v1604_v17 = vpop.f32.mrb[43].mxu1 }
 0x274   :  { %v1108_v19 = vmul.f32 %v1076_v13, %v956_v5  ;;  %v1006_v21 = vmul.f32 %v1602_v14, %v961_v16  ;;  %v1605_v22 = vadd.f32 %v1604_v17, %v1603_v15 }
 0x276   :  { %v1449_v26 = vpack.c.bf16 %v1108_v19, %v1107_v18  ;;  %v1045_v20 = vadd.f32 %v2048_v44, %v1006_v21  ;;  %v1007_v31 = vmul.f32 %v1605_v22, %v966_v23 }
 0x278   :  { %1473 = vst [vmem:[#allocation6 + $0x68] sm:$0xff] %v1449_v26   ;;  %v1077_v27 = vmax.f32 %v1045_v20, 0.0  ;;  %v1046_v35 = vadd.f32 %v2048_v44, %v1007_v31  ;;  %v1606_v29 = vpop.f32.mrb[44].mxu1 }
 0x279   :  { %v1607_v36 = vpop.f32.mrb[45].mxu1 }
 0x27a   :  { %v1078_v37 = vmax.f32 %v1046_v35, 0.0  ;;  %v1608_v32 = vadd.f32 %v1607_v36, %v1606_v29  ;;  %v1609_v38 = vpop.f32.mrb[46].mxu1  ;;  %v1109_v41 = vmul.f32 %v1077_v27, %v961_v16 }
 0x27b   :  { %v1610_v40 = vpop.f32.mrb[47].mxu1 }
 0x27c   :  { %v1110_v42 = vmul.f32 %v1078_v37, %v966_v23  ;;  %v1008_v43 = vmul.f32 %v1608_v32, %v971_v39  ;;  %v1611_v45 = vadd.f32 %v1610_v40, %v1609_v38 }
 0x27e   :  { %v1454_v47 = vpack.c.bf16 %v1110_v42, %v1109_v41  ;;  %v1047_v48 = vadd.f32 %v2048_v44, %v1008_v43  ;;  %v1009_v49 = vmul.f32 %v1611_v45, %v976_v46 }
 0x280   :  { %1474 = vst [vmem:[#allocation6 + $0x70] sm:$0xff] %v1454_v47   ;;  %v1079_v50 = vmax.f32 %v1047_v48, 0.0  ;;  %v1048_v51 = vadd.f32 %v2048_v44, %v1009_v49 }
 0x282   :  { %v1080_v52 = vmax.f32 %v1048_v51, 0.0  ;;  %v1111_v53 = vmul.f32 %v1079_v50, %v971_v39 }
 0x284   :  { %v1112_v54 = vmul.f32 %v1080_v52, %v976_v46 }
 0x286   :  { %v1459_v55 = vpack.c.bf16 %v1112_v54, %v1111_v53 }
 0x288   :  { %1475 = vst [vmem:[#allocation6 + $0x78] sm:$0xff] %v1459_v55  }
 0x289   :  { %1740 = shalt.err (!%p1737_p12)
}
 0x28a   :  { %s1741_s13 = scalar_lea.hbm %s2114_s5, 2048 }
 0x28b   :  { %p1742_p13 = scmp.ne.s32.totalorder %s2114_s5, %s1741_s13  ;;  %p1745_p0 = scmp.lt.u32.totalorder %s1741_s13, %s2114_s5 }
 0x28d   :  { %p1747_p1 = pnand %p1745_p0, %p1742_p13 }
 0x28f   :  { %1750 = shalt.err (!%p1747_p1)
}
 0x290   :  { %1284 = dma.vmem_to_hbm [thread:$0]  %s1279_s9, 2048, %s2114_s5, [#allocation5], %s1756_s28, %s1756_s28, %s1757_s29  }
 0x291   :  { %1753 = dma.done.wait [#allocation5], 2048  }
 0x292   :  { %1754 = vsyncadd [#allocation5], 4294965248 }
 0x293   :  { %1288 = vsyncpa [#allocation4], 1 }
 0x294   :  { %1289 = vsyncpa [#allocation5], 1 }

</bundles_post_ra>
